<compile_context>
chip_gen: v5e
topology: v5e:2x2
jax: 0.10.0
libtpu: 0.0.40
codegen_flags: <defaults>
</compile_context>

<pallas_src>
import jax
import jax.numpy as jnp
from jax import lax
from jax.experimental import pallas as pl
from jax.experimental.pallas import tpu as pltpu

NEG_INF = float("-inf")  # Python float, NOT a captured jax array.


def _vmem_bytes(tq, nbands, hidden, itemsize):
    """Rough per-step VMEM working set: double-buffered I/O + f32 temporaries."""
    io = 2 * (1 + 2 * nbands) * tq * hidden * itemsize      # q + nbands*(k, v)
    io += 2 * tq * hidden * itemsize                         # output
    tmp = (2 * nbands + 4) * tq * tq * 4                     # per-head scores/masks
    tmp += 4 * tq * hidden * 4                               # accumulators / out slab
    return io + tmp


def _choose_tiling(seq_len, window, hidden, itemsize):
    """Largest query tile whose working set fits a portable VMEM budget."""
    candidates = [t for t in (512, 256, 128, 64, 32, 16, 8) if seq_len % t == 0]
    if not candidates:
        candidates = [seq_len]          # block dim == full array dim is always legal
    budget = 40 * 1024 * 1024           # conservative: fits v7x's 64 MiB VMEM
    tq = candidates[-1]
    for t in candidates:                # largest first
        nq_t = seq_len // t
        nb_t = min(2 * (-(-window // t)) + 1, 2 * nq_t - 1)
        if _vmem_bytes(t, nb_t, hidden, itemsize) <= budget:
            tq = t
            break
    nq = seq_len // tq
    nbands = min(2 * (-(-window // tq)) + 1, 2 * nq - 1)
    vmem_limit = min(max(32 * 1024 * 1024,
                         int(1.5 * _vmem_bytes(tq, nbands, hidden, itemsize))),
                     64 * 1024 * 1024)
    return tq, nq, nbands, vmem_limit


def _make_kernel(*, window, seq_len, tq, nbands, num_heads, hidden):
    hd = hidden // num_heads
    half = (nbands - 1) // 2
    dimnums = (((1,), (1,)), ((), ()))   # contract last dim of both operands

    def kernel(*refs):
        q_ref = refs[0]
        k_refs = refs[1:1 + nbands]
        v_refs = refs[1 + nbands:1 + 2 * nbands]
        o_ref = refs[1 + 2 * nbands]

        qi = pl.program_id(1)
        base = qi - half
        q_start = qi * tq

        q_all = q_ref[0]                                   # (tq, hidden), native dtype
        k_blocks = [r[0] for r in k_refs]                  # nbands x (tq, hidden)
        v_blocks = [r[0] for r in v_refs]

        i_abs = q_start + lax.broadcasted_iota(jnp.int32, (tq, 1), 0)   # (tq, 1)
        col = lax.broadcasted_iota(jnp.int32, (1, tq), 1)                # (1, tq)

        # Rotation assignment: slot d holds the band tile t with t % nbands == d
        # (mirrors the index_map), so rebuild absolute columns from that tile.
        masks = []
        for d in range(nbands):
            t_int = base + (d - base) % nbands             # intended abs tile index
            j_abs = t_int * tq + col                       # (1, tq)
            in_band = jnp.abs(i_abs - j_abs) <= window
            in_range = (j_abs >= 0) & (j_abs < seq_len)
            masks.append(in_band & in_range)               # (tq, tq)

        # Window slots per row outside [0, S): carry a padded score of 0.
        n_pad = (jnp.maximum(window - i_abs, 0)
                 + jnp.maximum(i_abs + window - (seq_len - 1), 0)).astype(jnp.float32)
        pad_floor = jnp.where(n_pad > 0, 0.0, NEG_INF)     # (tq, 1)

        outs = []
        for h in range(num_heads):                          # static unroll over heads
            sl = slice(h * hd, (h + 1) * hd)
            q_h = q_all[:, sl]                              # (tq, hd)

            # Pass 1: per-slab scores + row max (no band concat, no k.T copy).
            scores = []
            m = pad_floor
            for d in range(nbands):
                k_h = k_blocks[d][:, sl]                    # (tq, hd)
                s = lax.dot_general(q_h, k_h, dimension_numbers=dimnums,
                                    preferred_element_type=jnp.float32)  # (tq, tq)
                scores.append(s)
                m = jnp.maximum(
                    m, jnp.max(jnp.where(masks[d], s, NEG_INF), axis=-1, keepdims=True))

            # Pass 2: exp / numerator sum / PV accumulation per slab.
            # exp(min(-m, 0)) avoids 0 * inf = NaN when n_pad == 0 and m << 0.
            denom = n_pad * jnp.exp(jnp.minimum(-m, 0.0))
            acc = jnp.zeros((tq, hd), jnp.float32)
            for d in range(nbands):
                num = jnp.where(masks[d], jnp.exp(scores[d] - m), 0.0)   # (tq, tq)
                denom = denom + jnp.sum(num, axis=-1, keepdims=True)
                v_h = v_blocks[d][:, sl]                    # (tq, hd)
                acc = acc + jnp.dot(num.astype(v_h.dtype), v_h,
                                    preferred_element_type=jnp.float32)
            outs.append(acc * pl.reciprocal(denom, approx=False))

        # Single lane-dense store of the whole (tq, hidden) slab.
        o_ref[0] = jnp.concatenate(outs, axis=-1).astype(o_ref.dtype)

    return kernel


def sparse_attention(query, key, value, attention_window, num_heads):
    """query/key/value: (batch, seq, hidden). Returns (batch, seq, hidden)."""
    B, S, hidden = query.shape
    if S % (attention_window * 2) != 0:
        raise ValueError("Sequence length must be a multiple of attention window size")
    if hidden % num_heads != 0:
        raise ValueError("hidden_size must be divisible by num_heads")

    itemsize = jnp.dtype(query.dtype).itemsize
    tq, nq, nbands, vmem_limit = _choose_tiling(S, attention_window, hidden, itemsize)
    half = (nbands - 1) // 2

    kernel = _make_kernel(window=attention_window, seq_len=S, tq=tq,
                          nbands=nbands, num_heads=num_heads, hidden=hidden)

    q_spec = pl.BlockSpec((1, tq, hidden), lambda b, qi: (b, qi, 0))
    out_spec = pl.BlockSpec((1, tq, hidden), lambda b, qi: (b, qi, 0))

    def kv_spec(d):
        # Rotation: slot d holds the band tile t in [qi-half, qi+half] with
        # t % nbands == d.  Only one slot's block index changes per qi step, so
        # Pallas skips the DMA for the other nbands-1 slots.  Out-of-range tiles
        # are clipped (duplicate data) and fully masked inside the kernel.
        def index_map(b, qi, d=d):
            base = qi - half
            t = base + (d - base) % nbands
            return (b, jnp.clip(t, 0, nq - 1), 0)
        return pl.BlockSpec((1, tq, hidden), index_map)

    k_specs = [kv_spec(d) for d in range(nbands)]
    v_specs = [kv_spec(d) for d in range(nbands)]

    w = attention_window
    cost = pl.CostEstimate(
        flops=4 * B * S * (2 * w + 1) * hidden,               # QK + PV
        transcendentals=B * S * (2 * w + 1) * num_heads,       # exp
        bytes_accessed=4 * B * S * hidden * itemsize)

    out = pl.pallas_call(
        kernel,
        out_shape=jax.ShapeDtypeStruct((B, S, hidden), query.dtype),
        grid=(B, nq),
        in_specs=[q_spec] + k_specs + v_specs,
        out_specs=out_spec,
        compiler_params=pltpu.CompilerParams(
            # qi must stay sequential for the rotation DMA-skip; batch is parallel.
            dimension_semantics=("parallel", "arbitrary"),
            vmem_limit_bytes=vmem_limit),
        cost_estimate=cost,
    )(query, *([key] * nbands), *([value] * nbands))
    return out


def _reference(query, key, value, w, num_heads):
    """Pure-JAX reference of the same sliding-window semantics."""
    B, S, hidden = query.shape
    hd = hidden // num_heads
    split = lambda x: x.reshape(B, S, num_heads, hd).transpose(0, 2, 1, 3)
    q, k, v = map(split, (query, key, value))                 # (B, H, S, hd)

    offsets = jnp.arange(-w, w + 1)
    idx = jnp.arange(S)[:, None] + offsets[None, :]           # (S, 2w+1)
    valid = (idx >= 0) & (idx < S)
    idx_c = jnp.clip(idx, 0, S - 1)

    k_g = k[:, :, idx_c, :]                                   # (B, H, S, 2w+1, hd)
    scores = jnp.einsum("bhsd,bhswd->bhsw", q, k_g)
    scores = jnp.where(valid[None, None], scores, 0.0)        # padding_value = 0
    p = jax.nn.softmax(scores, axis=-1)

    v_g = jnp.where(valid[None, None, :, :, None], v[:, :, idx_c, :], 0.0)
    out = jnp.einsum("bhsw,bhswd->bhsd", p, v_g)
    return out.transpose(0, 2, 1, 3).reshape(B, S, hidden)


if __name__ == "__main__":
    # Module config (no learnable parameters in SparseAttention.__init__).
    attention_window = 2
    hidden_size = 32
    num_heads = 4

    batch, seq = 2, 8   # seq % (2 * attention_window) == 0

    key0 = jax.random.PRNGKey(0)
    kq, kk, kv = jax.random.split(key0, 3)
    query = jax.random.normal(kq, (batch, seq, hidden_size), dtype=jnp.float32)
    key_t = jax.random.normal(kk, (batch, seq, hidden_size), dtype=jnp.float32)
    value = jax.random.normal(kv, (batch, seq, hidden_size), dtype=jnp.float32)

    out = sparse_attention(query, key_t, value, attention_window, num_heads)
    out = jax.block_until_ready(out)

    ref = _reference(query, key_t, value, attention_window, num_heads)
    assert out.shape == (batch, seq, hidden_size)
    assert jnp.allclose(out, ref, atol=1e-5, rtol=1e-5), "mismatch vs reference"

    print("KERNEL_OK")
</pallas_src>

<mosaic_0001>
module attributes {stable_mosaic.version = 11 : i64} {
  func.func @kernel(%arg0: i32, %arg1: i32, %arg2: memref<1x8x32xf32, #tpu.memory_space<vmem>>, %arg3: memref<1x8x32xf32, #tpu.memory_space<vmem>>, %arg4: memref<1x8x32xf32, #tpu.memory_space<vmem>>, %arg5: memref<1x8x32xf32, #tpu.memory_space<vmem>>) attributes {dimension_semantics = [#tpu.dimension_semantics<parallel>, #tpu.dimension_semantics<arbitrary>], iteration_bounds = array<i64: 2, 1>, scalar_prefetch = 0 : i64, scratch_operands = 0 : i64, tpu.core_type = #tpu.core_type<tc>, window_params = [{transform_indices = @transform_0, window_bounds = array<i64: 1, 8, 32>}, {transform_indices = @transform_1, window_bounds = array<i64: 1, 8, 32>}, {transform_indices = @transform_2, window_bounds = array<i64: 1, 8, 32>}, {transform_indices = @transform_3, window_bounds = array<i64: 1, 8, 32>}]} {
    %c0_i32 = arith.constant 0 : i32
    %0 = arith.subi %arg1, %c0_i32 : i32
    %c8_i32 = arith.constant 8 : i32
    %1 = arith.muli %arg1, %c8_i32 : i32
    %c0 = arith.constant 0 : index
    %c0_0 = arith.constant 0 : index
    %c0_1 = arith.constant 0 : index
    %2 = vector.load %arg2[%c0, %c0_0, %c0_1] : memref<1x8x32xf32, #tpu.memory_space<vmem>>, vector<1x8x32xf32>
    %3 = vector.shape_cast %2 : vector<1x8x32xf32> to vector<8x32xf32>
    %c0_2 = arith.constant 0 : index
    %c0_3 = arith.constant 0 : index
    %c0_4 = arith.constant 0 : index
    %4 = vector.load %arg3[%c0_2, %c0_3, %c0_4] : memref<1x8x32xf32, #tpu.memory_space<vmem>>, vector<1x8x32xf32>
    %5 = vector.shape_cast %4 : vector<1x8x32xf32> to vector<8x32xf32>
    %c0_5 = arith.constant 0 : index
    %c0_6 = arith.constant 0 : index
    %c0_7 = arith.constant 0 : index
    %6 = vector.load %arg4[%c0_5, %c0_6, %c0_7] : memref<1x8x32xf32, #tpu.memory_space<vmem>>, vector<1x8x32xf32>
    %7 = vector.shape_cast %6 : vector<1x8x32xf32> to vector<8x32xf32>
    %8 = tpu.iota {dimensions = array<i32: 0>} : vector<8x1xi32>
    %9 = vector.broadcast %1 : i32 to vector<8x1xi32>
    %10 = arith.addi %9, %8 : vector<8x1xi32>
    %11 = tpu.iota {dimensions = array<i32: 1>} : vector<1x8xi32>
    %c0_i32_8 = arith.constant 0 : i32
    %12 = arith.subi %c0_i32_8, %0 : i32
    %c1_i32 = arith.constant 1 : i32
    %c0_i32_9 = arith.constant 0 : i32
    %13 = arith.cmpi eq, %c1_i32, %c0_i32_9 : i32
    %c1_i32_10 = arith.constant 1 : i32
    %14 = arith.select %13, %c1_i32_10, %c1_i32 : i32
    %15 = arith.remsi %12, %14 : i32
    %c0_i32_11 = arith.constant 0 : i32
    %16 = arith.cmpi ne, %15, %c0_i32_11 : i32
    %c0_i32_12 = arith.constant 0 : i32
    %17 = arith.cmpi slt, %15, %c0_i32_12 : i32
    %c0_i32_13 = arith.constant 0 : i32
    %18 = arith.cmpi slt, %14, %c0_i32_13 : i32
    %19 = arith.xori %17, %18 : i1
    %20 = arith.andi %19, %16 : i1
    %21 = arith.addi %15, %14 : i32
    %22 = arith.select %20, %21, %15 : i32
    %23 = arith.addi %0, %22 : i32
    %c8_i32_14 = arith.constant 8 : i32
    %24 = arith.muli %23, %c8_i32_14 : i32
    %25 = vector.broadcast %24 : i32 to vector<1x8xi32>
    %26 = arith.addi %25, %11 : vector<1x8xi32>
    %27 = vector.broadcast %10 : vector<8x1xi32> to vector<8x8xi32>
    %28 = vector.broadcast %26 : vector<1x8xi32> to vector<8x8xi32>
    %29 = arith.subi %27, %28 : vector<8x8xi32>
    %30 = math.absi %29 : vector<8x8xi32>
    %c2_i32 = arith.constant 2 : i32
    %31 = vector.broadcast %c2_i32 : i32 to vector<8x8xi32>
    %32 = arith.cmpi sle, %30, %31 : vector<8x8xi32>
    %c0_i32_15 = arith.constant 0 : i32
    %33 = vector.broadcast %c0_i32_15 : i32 to vector<1x8xi32>
    %34 = arith.cmpi sge, %26, %33 : vector<1x8xi32>
    %c8_i32_16 = arith.constant 8 : i32
    %35 = vector.broadcast %c8_i32_16 : i32 to vector<1x8xi32>
    %36 = arith.cmpi slt, %26, %35 : vector<1x8xi32>
    %37 = arith.andi %34, %36 : vector<1x8xi1>
    %38 = vector.broadcast %37 : vector<1x8xi1> to vector<8x8xi1>
    %39 = arith.andi %32, %38 : vector<8x8xi1>
    %c2_i32_17 = arith.constant 2 : i32
    %40 = vector.broadcast %c2_i32_17 : i32 to vector<8x1xi32>
    %41 = arith.subi %40, %10 : vector<8x1xi32>
    %c0_i32_18 = arith.constant 0 : i32
    %42 = vector.broadcast %c0_i32_18 : i32 to vector<8x1xi32>
    %43 = arith.maxsi %41, %42 : vector<8x1xi32>
    %c2_i32_19 = arith.constant 2 : i32
    %44 = vector.broadcast %c2_i32_19 : i32 to vector<8x1xi32>
    %45 = arith.addi %10, %44 : vector<8x1xi32>
    %c7_i32 = arith.constant 7 : i32
    %46 = vector.broadcast %c7_i32 : i32 to vector<8x1xi32>
    %47 = arith.subi %45, %46 : vector<8x1xi32>
    %c0_i32_20 = arith.constant 0 : i32
    %48 = vector.broadcast %c0_i32_20 : i32 to vector<8x1xi32>
    %49 = arith.maxsi %47, %48 : vector<8x1xi32>
    %50 = arith.addi %43, %49 : vector<8x1xi32>
    %51 = arith.sitofp %50 : vector<8x1xi32> to vector<8x1xf32>
    %cst = arith.constant 0.000000e+00 : f32
    %52 = vector.broadcast %cst : f32 to vector<8x1xf32>
    %53 = arith.cmpf ogt, %51, %52 : vector<8x1xf32>
    %cst_21 = arith.constant 0.000000e+00 : f32
    %cst_22 = arith.constant 0xFF800000 : f32
    %54 = vector.broadcast %cst_21 : f32 to vector<8x1xf32>
    %55 = vector.broadcast %cst_22 : f32 to vector<8x1xf32>
    %56 = arith.select %53, %54, %55 : vector<8x1xi1>, vector<8x1xf32>
    %57 = vector.extract_strided_slice %3 {offsets = [0, 0], sizes = [8, 8], strides = [1, 1]} : vector<8x32xf32> to vector<8x8xf32>
    %58 = vector.extract_strided_slice %5 {offsets = [0, 0], sizes = [8, 8], strides = [1, 1]} : vector<8x32xf32> to vector<8x8xf32>
    %cst_23 = arith.constant dense<0.000000e+00> : vector<8x8xf32>
    %59 = tpu.matmul %57, %58, %cst_23 {dimension_numbers = #tpu.dot_dimension_numbers<[1], [1], [0], [0], [0, 0, 1, 0], [], []>} : vector<8x8xf32>, vector<8x8xf32>, vector<8x8xf32> -> vector<8x8xf32>
    %cst_24 = arith.constant 0xFF800000 : f32
    %60 = vector.broadcast %cst_24 : f32 to vector<8x8xf32>
    %61 = arith.select %39, %59, %60 : vector<8x8xi1>, vector<8x8xf32>
    %cst_25 = arith.constant dense<0xFF800000> : vector<8xf32>
    %62 = vector.multi_reduction <maximumf>, %61, %cst_25 [1] : vector<8x8xf32> to vector<8xf32>
    %63 = vector.shape_cast %62 : vector<8xf32> to vector<8x1xf32>
    %64 = arith.maximumf %56, %63 : vector<8x1xf32>
    %cst_26 = arith.constant 0.000000e+00 : f32
    %65 = vector.broadcast %cst_26 : f32 to vector<8x1xf32>
    %66 = arith.subf %65, %64 : vector<8x1xf32>
    %cst_27 = arith.constant 0.000000e+00 : f32
    %67 = vector.broadcast %cst_27 : f32 to vector<8x1xf32>
    %68 = arith.minimumf %66, %67 : vector<8x1xf32>
    %69 = math.exp %68 : vector<8x1xf32>
    %70 = arith.mulf %51, %69 : vector<8x1xf32>
    %cst_28 = arith.constant 0.000000e+00 : f32
    %71 = vector.broadcast %cst_28 : f32 to vector<8x8xf32>
    %72 = vector.broadcast %64 : vector<8x1xf32> to vector<8x8xf32>
    %73 = arith.subf %59, %72 : vector<8x8xf32>
    %74 = math.exp %73 : vector<8x8xf32>
    %cst_29 = arith.constant 0.000000e+00 : f32
    %75 = vector.broadcast %cst_29 : f32 to vector<8x8xf32>
    %76 = arith.select %39, %74, %75 : vector<8x8xi1>, vector<8x8xf32>
    %cst_30 = arith.constant dense<0.000000e+00> : vector<8xf32>
    %77 = vector.multi_reduction <add>, %76, %cst_30 [1] : vector<8x8xf32> to vector<8xf32>
    %78 = vector.shape_cast %77 : vector<8xf32> to vector<8x1xf32>
    %79 = arith.addf %70, %78 : vector<8x1xf32>
    %80 = vector.extract_strided_slice %7 {offsets = [0, 0], sizes = [8, 8], strides = [1, 1]} : vector<8x32xf32> to vector<8x8xf32>
    %cst_31 = arith.constant dense<0.000000e+00> : vector<8x8xf32>
    %81 = tpu.matmul %76, %80, %cst_31 {dimension_numbers = #tpu.dot_dimension_numbers<[1], [0], [0], [1], [0, 0, 1, 1], [], []>} : vector<8x8xf32>, vector<8x8xf32>, vector<8x8xf32> -> vector<8x8xf32>
    %82 = arith.addf %71, %81 : vector<8x8xf32>
    %83 = tpu.reciprocal %79 : vector<8x1xf32> -> vector<8x1xf32>
    %84 = vector.broadcast %83 : vector<8x1xf32> to vector<8x8xf32>
    %85 = arith.mulf %82, %84 : vector<8x8xf32>
    %86 = vector.extract_strided_slice %3 {offsets = [0, 8], sizes = [8, 8], strides = [1, 1]} : vector<8x32xf32> to vector<8x8xf32>
    %87 = vector.extract_strided_slice %5 {offsets = [0, 8], sizes = [8, 8], strides = [1, 1]} : vector<8x32xf32> to vector<8x8xf32>
    %cst_32 = arith.constant dense<0.000000e+00> : vector<8x8xf32>
    %88 = tpu.matmul %86, %87, %cst_32 {dimension_numbers = #tpu.dot_dimension_numbers<[1], [1], [0], [0], [0, 0, 1, 0], [], []>} : vector<8x8xf32>, vector<8x8xf32>, vector<8x8xf32> -> vector<8x8xf32>
    %cst_33 = arith.constant 0xFF800000 : f32
    %89 = vector.broadcast %cst_33 : f32 to vector<8x8xf32>
    %90 = arith.select %39, %88, %89 : vector<8x8xi1>, vector<8x8xf32>
    %cst_34 = arith.constant dense<0xFF800000> : vector<8xf32>
    %91 = vector.multi_reduction <maximumf>, %90, %cst_34 [1] : vector<8x8xf32> to vector<8xf32>
    %92 = vector.shape_cast %91 : vector<8xf32> to vector<8x1xf32>
    %93 = arith.maximumf %56, %92 : vector<8x1xf32>
    %cst_35 = arith.constant 0.000000e+00 : f32
    %94 = vector.broadcast %cst_35 : f32 to vector<8x1xf32>
    %95 = arith.subf %94, %93 : vector<8x1xf32>
    %cst_36 = arith.constant 0.000000e+00 : f32
    %96 = vector.broadcast %cst_36 : f32 to vector<8x1xf32>
    %97 = arith.minimumf %95, %96 : vector<8x1xf32>
    %98 = math.exp %97 : vector<8x1xf32>
    %99 = arith.mulf %51, %98 : vector<8x1xf32>
    %cst_37 = arith.constant 0.000000e+00 : f32
    %100 = vector.broadcast %cst_37 : f32 to vector<8x8xf32>
    %101 = vector.broadcast %93 : vector<8x1xf32> to vector<8x8xf32>
    %102 = arith.subf %88, %101 : vector<8x8xf32>
    %103 = math.exp %102 : vector<8x8xf32>
    %cst_38 = arith.constant 0.000000e+00 : f32
    %104 = vector.broadcast %cst_38 : f32 to vector<8x8xf32>
    %105 = arith.select %39, %103, %104 : vector<8x8xi1>, vector<8x8xf32>
    %cst_39 = arith.constant dense<0.000000e+00> : vector<8xf32>
    %106 = vector.multi_reduction <add>, %105, %cst_39 [1] : vector<8x8xf32> to vector<8xf32>
    %107 = vector.shape_cast %106 : vector<8xf32> to vector<8x1xf32>
    %108 = arith.addf %99, %107 : vector<8x1xf32>
    %109 = vector.extract_strided_slice %7 {offsets = [0, 8], sizes = [8, 8], strides = [1, 1]} : vector<8x32xf32> to vector<8x8xf32>
    %cst_40 = arith.constant dense<0.000000e+00> : vector<8x8xf32>
    %110 = tpu.matmul %105, %109, %cst_40 {dimension_numbers = #tpu.dot_dimension_numbers<[1], [0], [0], [1], [0, 0, 1, 1], [], []>} : vector<8x8xf32>, vector<8x8xf32>, vector<8x8xf32> -> vector<8x8xf32>
    %111 = arith.addf %100, %110 : vector<8x8xf32>
    %112 = tpu.reciprocal %108 : vector<8x1xf32> -> vector<8x1xf32>
    %113 = vector.broadcast %112 : vector<8x1xf32> to vector<8x8xf32>
    %114 = arith.mulf %111, %113 : vector<8x8xf32>
    %115 = vector.extract_strided_slice %3 {offsets = [0, 16], sizes = [8, 8], strides = [1, 1]} : vector<8x32xf32> to vector<8x8xf32>
    %116 = vector.extract_strided_slice %5 {offsets = [0, 16], sizes = [8, 8], strides = [1, 1]} : vector<8x32xf32> to vector<8x8xf32>
    %cst_41 = arith.constant dense<0.000000e+00> : vector<8x8xf32>
    %117 = tpu.matmul %115, %116, %cst_41 {dimension_numbers = #tpu.dot_dimension_numbers<[1], [1], [0], [0], [0, 0, 1, 0], [], []>} : vector<8x8xf32>, vector<8x8xf32>, vector<8x8xf32> -> vector<8x8xf32>
    %cst_42 = arith.constant 0xFF800000 : f32
    %118 = vector.broadcast %cst_42 : f32 to vector<8x8xf32>
    %119 = arith.select %39, %117, %118 : vector<8x8xi1>, vector<8x8xf32>
    %cst_43 = arith.constant dense<0xFF800000> : vector<8xf32>
    %120 = vector.multi_reduction <maximumf>, %119, %cst_43 [1] : vector<8x8xf32> to vector<8xf32>
    %121 = vector.shape_cast %120 : vector<8xf32> to vector<8x1xf32>
    %122 = arith.maximumf %56, %121 : vector<8x1xf32>
    %cst_44 = arith.constant 0.000000e+00 : f32
    %123 = vector.broadcast %cst_44 : f32 to vector<8x1xf32>
    %124 = arith.subf %123, %122 : vector<8x1xf32>
    %cst_45 = arith.constant 0.000000e+00 : f32
    %125 = vector.broadcast %cst_45 : f32 to vector<8x1xf32>
    %126 = arith.minimumf %124, %125 : vector<8x1xf32>
    %127 = math.exp %126 : vector<8x1xf32>
    %128 = arith.mulf %51, %127 : vector<8x1xf32>
    %cst_46 = arith.constant 0.000000e+00 : f32
    %129 = vector.broadcast %cst_46 : f32 to vector<8x8xf32>
    %130 = vector.broadcast %122 : vector<8x1xf32> to vector<8x8xf32>
    %131 = arith.subf %117, %130 : vector<8x8xf32>
    %132 = math.exp %131 : vector<8x8xf32>
    %cst_47 = arith.constant 0.000000e+00 : f32
    %133 = vector.broadcast %cst_47 : f32 to vector<8x8xf32>
    %134 = arith.select %39, %132, %133 : vector<8x8xi1>, vector<8x8xf32>
    %cst_48 = arith.constant dense<0.000000e+00> : vector<8xf32>
    %135 = vector.multi_reduction <add>, %134, %cst_48 [1] : vector<8x8xf32> to vector<8xf32>
    %136 = vector.shape_cast %135 : vector<8xf32> to vector<8x1xf32>
    %137 = arith.addf %128, %136 : vector<8x1xf32>
    %138 = vector.extract_strided_slice %7 {offsets = [0, 16], sizes = [8, 8], strides = [1, 1]} : vector<8x32xf32> to vector<8x8xf32>
    %cst_49 = arith.constant dense<0.000000e+00> : vector<8x8xf32>
    %139 = tpu.matmul %134, %138, %cst_49 {dimension_numbers = #tpu.dot_dimension_numbers<[1], [0], [0], [1], [0, 0, 1, 1], [], []>} : vector<8x8xf32>, vector<8x8xf32>, vector<8x8xf32> -> vector<8x8xf32>
    %140 = arith.addf %129, %139 : vector<8x8xf32>
    %141 = tpu.reciprocal %137 : vector<8x1xf32> -> vector<8x1xf32>
    %142 = vector.broadcast %141 : vector<8x1xf32> to vector<8x8xf32>
    %143 = arith.mulf %140, %142 : vector<8x8xf32>
    %144 = vector.extract_strided_slice %3 {offsets = [0, 24], sizes = [8, 8], strides = [1, 1]} : vector<8x32xf32> to vector<8x8xf32>
    %145 = vector.extract_strided_slice %5 {offsets = [0, 24], sizes = [8, 8], strides = [1, 1]} : vector<8x32xf32> to vector<8x8xf32>
    %cst_50 = arith.constant dense<0.000000e+00> : vector<8x8xf32>
    %146 = tpu.matmul %144, %145, %cst_50 {dimension_numbers = #tpu.dot_dimension_numbers<[1], [1], [0], [0], [0, 0, 1, 0], [], []>} : vector<8x8xf32>, vector<8x8xf32>, vector<8x8xf32> -> vector<8x8xf32>
    %cst_51 = arith.constant 0xFF800000 : f32
    %147 = vector.broadcast %cst_51 : f32 to vector<8x8xf32>
    %148 = arith.select %39, %146, %147 : vector<8x8xi1>, vector<8x8xf32>
    %cst_52 = arith.constant dense<0xFF800000> : vector<8xf32>
    %149 = vector.multi_reduction <maximumf>, %148, %cst_52 [1] : vector<8x8xf32> to vector<8xf32>
    %150 = vector.shape_cast %149 : vector<8xf32> to vector<8x1xf32>
    %151 = arith.maximumf %56, %150 : vector<8x1xf32>
    %cst_53 = arith.constant 0.000000e+00 : f32
    %152 = vector.broadcast %cst_53 : f32 to vector<8x1xf32>
    %153 = arith.subf %152, %151 : vector<8x1xf32>
    %cst_54 = arith.constant 0.000000e+00 : f32
    %154 = vector.broadcast %cst_54 : f32 to vector<8x1xf32>
    %155 = arith.minimumf %153, %154 : vector<8x1xf32>
    %156 = math.exp %155 : vector<8x1xf32>
    %157 = arith.mulf %51, %156 : vector<8x1xf32>
    %cst_55 = arith.constant 0.000000e+00 : f32
    %158 = vector.broadcast %cst_55 : f32 to vector<8x8xf32>
    %159 = vector.broadcast %151 : vector<8x1xf32> to vector<8x8xf32>
    %160 = arith.subf %146, %159 : vector<8x8xf32>
    %161 = math.exp %160 : vector<8x8xf32>
    %cst_56 = arith.constant 0.000000e+00 : f32
    %162 = vector.broadcast %cst_56 : f32 to vector<8x8xf32>
    %163 = arith.select %39, %161, %162 : vector<8x8xi1>, vector<8x8xf32>
    %cst_57 = arith.constant dense<0.000000e+00> : vector<8xf32>
    %164 = vector.multi_reduction <add>, %163, %cst_57 [1] : vector<8x8xf32> to vector<8xf32>
    %165 = vector.shape_cast %164 : vector<8xf32> to vector<8x1xf32>
    %166 = arith.addf %157, %165 : vector<8x1xf32>
    %167 = vector.extract_strided_slice %7 {offsets = [0, 24], sizes = [8, 8], strides = [1, 1]} : vector<8x32xf32> to vector<8x8xf32>
    %cst_58 = arith.constant dense<0.000000e+00> : vector<8x8xf32>
    %168 = tpu.matmul %163, %167, %cst_58 {dimension_numbers = #tpu.dot_dimension_numbers<[1], [0], [0], [1], [0, 0, 1, 1], [], []>} : vector<8x8xf32>, vector<8x8xf32>, vector<8x8xf32> -> vector<8x8xf32>
    %169 = arith.addf %158, %168 : vector<8x8xf32>
    %170 = tpu.reciprocal %166 : vector<8x1xf32> -> vector<8x1xf32>
    %171 = vector.broadcast %170 : vector<8x1xf32> to vector<8x8xf32>
    %172 = arith.mulf %169, %171 : vector<8x8xf32>
    %173 = tpu.concatenate %85, %114, %143, %172 in 1 : vector<8x8xf32>, vector<8x8xf32>, vector<8x8xf32>, vector<8x8xf32> -> vector<8x32xf32>
    %c0_59 = arith.constant 0 : index
    %c0_60 = arith.constant 0 : index
    %c0_61 = arith.constant 0 : index
    %174 = vector.load %arg5[%c0_59, %c0_60, %c0_61] : memref<1x8x32xf32, #tpu.memory_space<vmem>>, vector<1x8x32xf32>
    %175 = vector.shape_cast %174 : vector<1x8x32xf32> to vector<8x32xf32>
    %176 = vector.shape_cast %173 : vector<8x32xf32> to vector<1x8x32xf32>
    tpu.vector_store %arg5[%c0_59, %c0_60, %c0_61], %176 {strides = array<i32>} : memref<1x8x32xf32, #tpu.memory_space<vmem>>, vector<1x8x32xf32>,
    return
  }
  func.func @transform_0(%arg0: i32, %arg1: i32) -> (i32, i32, i32) {
    %c0_i32 = arith.constant 0 : i32
    %c0_i32_0 = arith.constant 0 : i32
    return %arg0, %arg1, %c0_i32 : i32, i32, i32
  }
  func.func @transform_1(%arg0: i32, %arg1: i32) -> (i32, i32, i32) {
    %c0_i32 = arith.constant 0 : i32
    %0 = arith.subi %arg1, %c0_i32 : i32
    %c0_i32_0 = arith.constant 0 : i32
    %1 = arith.subi %c0_i32_0, %0 : i32
    %c1_i32 = arith.constant 1 : i32
    %c0_i32_1 = arith.constant 0 : i32
    %2 = arith.cmpi eq, %c1_i32, %c0_i32_1 : i32
    %c1_i32_2 = arith.constant 1 : i32
    %3 = arith.select %2, %c1_i32_2, %c1_i32 : i32
    %4 = arith.remsi %1, %3 : i32
    %c0_i32_3 = arith.constant 0 : i32
    %5 = arith.cmpi ne, %4, %c0_i32_3 : i32
    %c0_i32_4 = arith.constant 0 : i32
    %6 = arith.cmpi slt, %4, %c0_i32_4 : i32
    %c0_i32_5 = arith.constant 0 : i32
    %7 = arith.cmpi slt, %3, %c0_i32_5 : i32
    %8 = arith.xori %6, %7 : i1
    %9 = arith.andi %8, %5 : i1
    %10 = arith.addi %4, %3 : i32
    %11 = arith.select %9, %10, %4 : i32
    %12 = arith.addi %0, %11 : i32
    %c0_i32_6 = arith.constant 0 : i32
    %c0_i32_7 = arith.constant 0 : i32
    %13 = arith.maxsi %c0_i32_6, %12 : i32
    %14 = arith.minsi %c0_i32_7, %13 : i32
    %c0_i32_8 = arith.constant 0 : i32
    %c0_i32_9 = arith.constant 0 : i32
    return %arg0, %14, %c0_i32_8 : i32, i32, i32
  }
  func.func @transform_2(%arg0: i32, %arg1: i32) -> (i32, i32, i32) {
    %c0_i32 = arith.constant 0 : i32
    %0 = arith.subi %arg1, %c0_i32 : i32
    %c0_i32_0 = arith.constant 0 : i32
    %1 = arith.subi %c0_i32_0, %0 : i32
    %c1_i32 = arith.constant 1 : i32
    %c0_i32_1 = arith.constant 0 : i32
    %2 = arith.cmpi eq, %c1_i32, %c0_i32_1 : i32
    %c1_i32_2 = arith.constant 1 : i32
    %3 = arith.select %2, %c1_i32_2, %c1_i32 : i32
    %4 = arith.remsi %1, %3 : i32
    %c0_i32_3 = arith.constant 0 : i32
    %5 = arith.cmpi ne, %4, %c0_i32_3 : i32
    %c0_i32_4 = arith.constant 0 : i32
    %6 = arith.cmpi slt, %4, %c0_i32_4 : i32
    %c0_i32_5 = arith.constant 0 : i32
    %7 = arith.cmpi slt, %3, %c0_i32_5 : i32
    %8 = arith.xori %6, %7 : i1
    %9 = arith.andi %8, %5 : i1
    %10 = arith.addi %4, %3 : i32
    %11 = arith.select %9, %10, %4 : i32
    %12 = arith.addi %0, %11 : i32
    %c0_i32_6 = arith.constant 0 : i32
    %c0_i32_7 = arith.constant 0 : i32
    %13 = arith.maxsi %c0_i32_6, %12 : i32
    %14 = arith.minsi %c0_i32_7, %13 : i32
    %c0_i32_8 = arith.constant 0 : i32
    %c0_i32_9 = arith.constant 0 : i32
    return %arg0, %14, %c0_i32_8 : i32, i32, i32
  }
  func.func @transform_3(%arg0: i32, %arg1: i32) -> (i32, i32, i32) {
    %c0_i32 = arith.constant 0 : i32
    %c0_i32_0 = arith.constant 0 : i32
    return %arg0, %arg1, %c0_i32 : i32, i32, i32
  }
}

</mosaic_0001>

<bundles_post_ra>
// kernel: tpu_custom_call.1
= control target key start
LH: loop header
LB: loop body
LE: loop exit
PB: predicated region body
PF: predicated region fallthrough
CT: control target
= control target key end

     0   :  { %s1419_s0 = inlined_call_operand.hbm [shape: f32[2,8,32], index: 0, kind: input, shape index: {}]   ;;  %s1420_s1 = inlined_call_operand.hbm [shape: f32[2,8,32], index: 1, kind: input, shape index: {}]   ;;  %s1421_s2 = inlined_call_operand.hbm [shape: f32[2,8,32], index: 2, kind: input, shape index: {}]   ;;  %s1422_s3 = inlined_call_operand.hbm [shape: f32[2,8,32], index: 3, kind: output, shape index: {}]  }
   0x1   :  { %1425 = sst [smem:[#allocation15_spill]] %s1420_s1 }
   0x2   :  { %8 = vsyncpa [#allocation3], 0 }
   0x3   :  { %10 = vsyncpa [#allocation3 + $0x1], 0 }
   0x4   :  { %11 = vsyncpa [#allocation6], 0 }
   0x5   :  { %13 = vsyncpa [#allocation6 + $0x1], 0 }
   0x6   :  { %14 = vsyncpa [#allocation4], 0 }
   0x7   :  { %16 = vsyncpa [#allocation4 + $0x1], 0  ;;  %s1197_s12 = smov 0   ;;  %s1199_s13 = smov 0  }
   0x8   :  { %s1201_s14 = smov 0   ;;  %s1203_s15 = smov 0  }
   0x9   :  { %s1205_s16 = smov 0   ;;  %s1207_s17 = smov 0  }
   0xa LB: > { %1426 = sst [smem:[#allocation12_spill]] %s1164_s16  ;;  %s1228_s18 = sadd.s32 4294967295, %s1168_s17   ;;  %s1168_s17 = sphi %s1207_s17, %s22_s17   ;;  %s1164_s16 = sphi %s1205_s16, %s1440_s16   ;;  %s1160_s15 = sphi %s1203_s15, %s1439_s15   ;;  %s1156_s14 = sphi %s1201_s14, %s1443_s14   ;;  %s1152_s13 = sphi %s1199_s13, %s1442_s13   ;;  %s1148_s12 = sphi %s1197_s12, %s1441_s12  }
   0xb   : > { %s858_s19 = sadd.s32 4294967294, %s1168_s17   ;;  %s34_s20 = sadd.s32 1, %s1164_s16 }
   0xc   : > { %s43_s21 = sadd.s32 1, %s1156_s14  ;;  %p36_p0 = scmp.ge.s32.totalorder %s34_s20, 2 }
   0xd   : > { %p50_p1 = scmp.ne.s32.totalorder %s1156_s14, %s1152_s13  ;;  %p51_p2 = scmp.eq.s32.totalorder %s1168_s17, 0 }
   0xe   : > { %p56_p3 = scmp.ne.s32.totalorder %s1152_s13, %s1148_s12  ;;  %s1445_s20 = smov (%p36_p0, %s34_s20), 0 }
   0xf   : > { %1427 = sst [smem:[#allocation13_spill]] %s1445_s20  ;;  %p1240_p4 = por %p51_p2, %p50_p1 }
  0x10   : > { %p57_p5 = scmp.eq.s32.totalorder %s1228_s18, 0  ;;  %s38_s23 = ssub.s32 %s1164_s16, %s1445_s20 }
  0x11   : > { %p154_p6 = scmp.eq.s32.totalorder %s1228_s18, 1  ;;  %p41_p7 = scmp.eq.s32.totalorder %s38_s23, 0 }
  0x12   : > { %p1248_p8 = por %p57_p5, %p56_p3  ;;  %p160_p10 = scmp.eq.s32.totalorder %s858_s19, 1 }
  0x13   : > { %p1252_p9 = por %p154_p6, %p50_p1  ;;  %p860_p12 = scmp.ge.s32.totalorder %s1168_s17, 2 }
  0x14   : > { %s1257_s26 = scalar_select %p41_p7, %s1156_s14, %s43_s21  }
  0x15   : > { %p1259_p11 = por %p160_p10, %p56_p3  ;;  %p911_p13 = scmp.lt.s32.totalorder %s1168_s17, 2 }
  0x16   : > { %1431 = sst [smem:[#allocation14_spill]] %s1257_s26  ;;  %s180_s28 = sand.u32 1, %s1156_s14  }
  0x17   : > { %s861_s29 = sshll.u32 %s180_s28, 3  ;;  %s862_s30 = sshll.u32 %s1164_s16, 3 }
  0x18   : > { %p1269_p0 = pnand %p911_p13, %p1240_p4  ;;  %s200_s5 = sand.u32 1, %s1168_s17  }
  0x19   : > { %s1434_s1 = sld [smem:[#allocation15_spill]]  ;;  %s204_s10 = scalar_lea.vmem [#allocation5], %s861_s29 }
  0x1a   : > { %s217_s11 = sshll.u32 %s204_s10, 4  ;;  %s201_s19 = scalar_lea.sflag [#allocation6], %s200_s5  ;;  %s218_s11 = int_to_ptr.vmem [resolvable:$true] %s217_s11 }
  0x1b   : > { %p867_p1 = scmp.ge.s32.totalorder %s1168_s17, 1  ;;  %p246_p2 = scmp.lt.s32.totalorder %s1168_s17, 3 }
  0x1c   : > { %s189_s6 = scalar_lea.hbm %s1419_s0, %s862_s30  ;;  %s181_s10 = scalar_lea.sflag [#allocation3], %s180_s28 }
  0x1d   : > { %p1281_p3 = pnand %p867_p1, %p246_p2  ;;  %s191_s7 = sshll.u32 %s189_s6, 4  ;;  %s192_s7 = int_to_ptr.hbm [resolvable:$true] %s191_s7 }
  0x1e   : > { %s228_s16 = scalar_lea.vmem [#allocation7], %s861_s29  ;;  %s1298_s22 = sand.u32 (!%p1281_p3), 1, %s1152_s13  }
  0x1f   : > { %s213_s8 = scalar_lea.hbm %s1434_s1, %s862_s30  ;;  %s241_s26 = sshll.u32 %s228_s16, 4  ;;  %s242_s26 = int_to_ptr.vmem [resolvable:$true] %s241_s26 }
  0x20   : > { %s215_s9 = sshll.u32 %s213_s8, 4  ;;  %s184_s8 = scalar_lea.vmem [#allocation2], %s861_s29  ;;  %s216_s9 = int_to_ptr.hbm [resolvable:$true] %s215_s9 }
  0x21   : > { %903 = dma.hbm_to_vmem [thread:$0]  (!%p1269_p0), %s216_s9, 128, %s218_s11, %s201_s19  }
  0x22   : > { %s193_s1 = sshll.u32 %s184_s8, 4  ;;  %s237_s11 = scalar_lea.hbm %s1421_s2, %s862_s30  ;;  %s194_s1 = int_to_ptr.vmem [resolvable:$true] %s193_s1 }
  0x23   : > { %900 = dma.hbm_to_vmem [thread:$0]  (!%p1269_p0), %s192_s7, 128, %s194_s1, %s181_s10  }
  0x24   : > { %s239_s20 = sshll.u32 %s237_s11, 4  ;;  %250 = sbr.rel (%p1281_p3) target bundleno = 841 (0x349), region = 32  ;;  %s240_s20 = int_to_ptr.hbm [resolvable:$true] %s239_s20 }
  0x25   : > { %906 = dma.hbm_to_vmem [thread:$0]  (!%p1269_p0), %s240_s20, 128, %s242_s26, %s201_s19  }
  0x26   : > { %s1301_s1 = sshll.u32 (!%p1281_p3), %s1298_s22, 3  ;;  %s253_s28 = scalar_lea.sflag (!%p1281_p3), [#allocation3], %s1298_s22 }
  0x27   : > { %s256_s30 = scalar_lea.vmem (!%p1281_p3), [#allocation2], %s1301_s1 }
  0x29   : > { %1135 = dma.done.wait (%p1248_p8), %s253_s28, 128  }
  0x2a   : > { %1137 = vsyncadd (%p1248_p8), %s253_s28, 4294967168  ;;  %s262_s16 = sand.u32 1, %s1228_s18   ;;  %s266_s26 = scalar_lea.vmem [#allocation5], %s1301_s1 }
  0x2b   : > { %s263_s20 = scalar_lea.sflag [#allocation6], %s262_s16 }
  0x2c   : > { %1139 = dma.done.wait (%p1248_p8), %s263_s20, 256  }
  0x2d   : > { %1141 = vsyncadd (%p1248_p8), %s263_s20, 4294967040  ;;  %vm351_vm0 = vcmask 64512   ;;  %v320_v0 = vld [vmem:[%s266_s26] sm:$0xff]  ;;  %v319_v1 = vld [vmem:[%s256_s30] sm:$0xff]  ;;  %s1170_s29 = smov 120   ;;  %s1171_s4 = smov 104   ;;  %v322_v3 = vlaneseq }
  0x2e   : > { %873 = vmatpush.xpose.msk.msra.mxu0 %vm351_vm0, %v320_v0  ;;  %434 = vrot.lane.b32.xlu1 %v319_v1, %s1170_s29  ;;  %s1172_s18 = smov 112   ;;  %s276_s24 = scalar_lea.vmem [#allocation7], %s1301_s1  ;;  %v1173_v24 = vmov -inf  }
  0x2f   : > { %611 = vrot.lane.b32.xlu2 %v320_v0, %s1171_s4  ;;  %v323_v4 = vshrl.u32 %v322_v3, 7  ;;  %v327_v5 = vand.u32 127, %v322_v3  ;;  %v321_v19 = vld [vmem:[%s276_s24] sm:$0xff]  ;;  %s1174_s19 = smov 24   ;;  %s1175_s21 = smov 8  }
  0x30   : > { %414 = vmatpush.msra.mxu1 %v321_v19  ;;  %s1176_s23 = smov 16   ;;  %s886_s6 = sshll.u32 %s1160_s15, 3 }
  0x31   : > { %874 = vmatmul.msk.f32.vlgmr.msra.gmra.mxu0 %vm351_vm0, %v319_v1  ;;  %v329_v6 = vsub.s32 %v323_v4, %v327_v5  ;;  %vm335_vm3 = vcmp.lt.s32.totalorder %v327_v5, 8  ;;  %v343_v16 = vadd.s32 2, %v323_v4  ;;  %v340_v17 = vsub.s32 2, %v323_v4  ;;  %s727_s10 = scalar_lea.hbm %s1422_s3, %s886_s6  ;;  %s309_s5 = scalar_lea.vmem [#allocation8], %s1301_s1 }
  0x32   : > { %s729_s9 = sshll.u32 %s309_s5, 4  ;;  %s731_s11 = sshll.u32 %s727_s10, 4  ;;  %s730_s9 = int_to_ptr.vmem [resolvable:$true] %s729_s9  ;;  %s732_s11 = int_to_ptr.hbm [resolvable:$true] %s731_s11 }
  0x33   : > { %v331_v8 = vsub.s32 0, %v329_v6  ;;  %vm330_vm1 = vcmp.lt.s32.totalorder %v329_v6, 0  ;;  %v872_v18 = vadd.s32 4294967289, %v343_v16  ;;  %vm341_vm5 = vcmp.gt.s32.totalorder %v340_v17, 0  ;;  %s716_s15 = scalar_lea.sflag [#allocation4], %s1298_s22  ;;  %s1096_s28 = sshra.s32 %s732_s11, 4  ;;  %s1097_s28 = int_to_ptr.hbm [resolvable:$true] %s1096_s28 }
  0x34   : > { %v342_v20 = vsel %vm341_vm5, %v340_v17, 0  ;;  %s1098_s30 = scalar_lea.hbm %s1097_s28, 8  ;;  %s1102_s20 = scalar_lea.hbm %s1422_s3, 16 }
  0x35   : > { %v332_v9 = vsel %vm330_vm1, %v331_v8, %v329_v6  ;;  %vm345_vm6 = vcmp.gt.s32.totalorder %v872_v18, 0  ;;  %p1099_p4 = scmp.ne.s32.totalorder %s1097_s28, %s1098_s30  ;;  %p1103_p7 = scmp.lt.s32.totalorder %s1097_s28, %s1422_s3 }
  0x36   : > { %524 = vrot.lane.b32.xlu1 %v320_v0, %s1172_s18  ;;  %vm333_vm2 = vcmp.le.s32.totalorder %v332_v9, 2  ;;  %v346_v21 = vsel %vm345_vm6, %v872_v18, 0  ;;  %p1104_p8 = scmp.lt.s32.totalorder %s1102_s20, %s1098_s30 }
  0x37   : > { %522 = vrot.lane.b32.xlu2 %v319_v1, %s1172_s18  ;;  %vm1323_vm4 = vmand %vm333_vm2, %vm335_vm3  ;;  %v347_v22 = vadd.s32 %v346_v21, %v342_v20  ;;  %p1100_p5 = pnand %p1099_p4, %p1252_p9 }
  0x38   : > { %p1105_p10 = por %p1104_p8, %p1103_p7 }
  0x39   : > { %v1334_v23 = vcvt.s32.f32 %v347_v22  ;;  %p1101_p6 = pneg %p1100_p5 }
  0x3b   : > { %vm349_vm7 = vcmp.gt.f32.partialorder %v1334_v23, 0.0  ;;  %p1106_p13 = pnand %p1105_p10, %p1101_p6 }
  0x3c   : > { %v350_v25 = vsel %vm349_vm7, 0.0, %v1173_v24 }
  0x3e   : > { %609 = vrot.lane.b32.xlu1 %v319_v1, %s1171_s4 }
  0x89   : > { %v612_v2 = vpop.permute.xlu2 %611 }
  0x8a   : > { %882 = vmatpush.xpose.msk.msrb.mxu0 %vm351_vm0, %v612_v2 }
  0x91   : > { %v523_v36 = vpop.permute.xlu2 %522 }
  0xa0   : > { %v435_v7 = vpop.permute.xlu1 %434 }
  0xa8   : > { %v525_v10 = vpop.permute.xlu1 %524 }
  0xa9   : > { %879 = vmatpush.xpose.msk.msrb.mxu1 %vm351_vm0, %v525_v10 }
  0xae   : > { %v375_v12 = vpop.f32.mrf.mxu0 }
  0xaf   : > { %v378_v13 = vsel %vm1323_vm4, %v375_v12, -inf }
  0xb0   : > { %v379_v14 = vsel %vm351_vm0, %v378_v13, -inf  ;;  %v610_v15 = vpop.permute.xlu1 %609 }
  0xb1   : > { %380 = vmax.xlane.f32.xlu0 %v379_v14  ;;  %883 = vmatmul.msk.f32.vlgmr.msrb.gmra.mxu0 %vm351_vm0, %v610_v15 }
  0xc5   : > { %436 = vrot.lane.b32.xlu0 %v320_v0, %s1170_s29 }
 0x124   : > { %v381_v26 = vpop.xlane.xlu0 %380 }
 0x125   : > { %v1337_v27 = vmax.f32 %v350_v25, %v381_v26 }
 0x127   : > { %v388_v28 = vsub.f32 %v375_v12, %v1337_v27 }
 0x129   : > { %v389_v29 = vmul.f32 1.442695, %v388_v28 }
 0x12b   : > { %968 = vpow2.f32 %v389_v29 }
 0x12e   : > { %v634_v30 = vpop.f32.mrf.mxu0 }
 0x12f   : > { %v637_v31 = vsel %vm1323_vm4, %v634_v30, -inf }
 0x130   : > { %v638_v32 = vsel %vm351_vm0, %v637_v31, -inf }
 0x131   : > { %v969_v33 = vpop.eup %968  ;;  %639 = vmax.xlane.f32.xlu0 %v638_v32 }
 0x132   : > { %v391_v34 = vsel %vm1323_vm4, %v969_v33, 0.0 }
 0x133   : > { %875 = vmatmul.msk.f32.vlgmr.msra.gmra.mxu1 %vm351_vm0, %v391_v34  ;;  %v392_v4 = vsel %vm351_vm0, %v391_v34, 0.0 }
 0x137   : > { %v437_v35 = vpop.permute.xlu0 %436 }
 0x138   : > { %876 = vmatpush.xpose.msk.msra.mxu2 %vm351_vm0, %v437_v35 }
 0x13b   : > { %877 = vmatmul.msk.f32.vlgmr.msra.gmra.mxu2 %vm351_vm0, %v435_v7  ;;  %880 = vmatmul.msk.f32.vlgmr.msrb.gmra.mxu1 %vm351_vm0, %v523_v36 }
 0x145   : > { %655 = vrot.lane.b32.xlu0 %v321_v19, %s1171_s4 }
 0x1a4   : > { %v640_v37 = vpop.xlane.xlu0 %639 }
 0x1a5   : > { %v641_v38 = vmax.f32 %v350_v25, %v640_v37 }
 0x1a7   : > { %v647_v39 = vsub.f32 %v634_v30, %v641_v38  ;;  %v642_v5 = vsub.f32 0.0, %v641_v38 }
 0x1a9   : > { %v648_v40 = vmul.f32 1.442695, %v647_v39  ;;  %v643_v6 = vmin.f32 %v642_v5, 0.0 }
 0x1ab   : > { %970 = vpow2.f32 %v648_v40  ;;  %v644_v7 = vmul.f32 1.442695, %v643_v6 }
 0x1b0   : > { %v1350_v41 = vpop.f32.mrf.mxu1 }
 0x1b1   : > { %v971_v42 = vpop.eup %970 }
 0x1b2   : > { %v650_v43 = vsel %vm1323_vm4, %v971_v42, 0.0 }
 0x1b3   : > { %v651_v51 = vsel %vm351_vm0, %v650_v43, 0.0 }
 0x1b7   : > { %v656_v44 = vpop.permute.xlu0 %655 }
 0x1b8   : > { %v547_v45 = vpop.f32.mrf.mxu1  ;;  %676 = vmatpush.msrb.mxu2 %v656_v44 }
 0x1b9   : > { %v550_v46 = vsel %vm1323_vm4, %v547_v45, -inf  ;;  %884 = vmatmul.msk.f32.vlgmr.msrb.gmra.mxu2 %vm351_vm0, %v650_v43 }
 0x1ba   : > { %v551_v47 = vsel %vm351_vm0, %v550_v46, -inf }
 0x1bb   : > { %552 = vmax.xlane.f32.xlu1 %v551_v47 }
 0x1be   : > { %v459_v48 = vpop.f32.mrf.mxu2 }
 0x1bf   : > { %v462_v49 = vsel %vm1323_vm4, %v459_v48, -inf }
 0x1c0   : > { %v463_v50 = vsel %vm351_vm0, %v462_v49, -inf }
 0x1c1   : > { %464 = vmax.xlane.f32.xlu2 %v463_v50 }
 0x1d4   : > { %568 = vrot.lane.b32.xlu1 %v321_v19, %s1172_s18 }
 0x1d9   : > { %481 = vrot.lane.b32.xlu2 %v321_v19, %s1170_s29 }
 0x1fe   : > { %652 = vadd.xlane.f32.xlu1 %v651_v51 }
 0x22e   : > { %v553_v52 = vpop.xlane.xlu1 %552 }
 0x22f   : > { %v554_v53 = vmax.f32 %v350_v25, %v553_v52 }
 0x231   : > { %v560_v54 = vsub.f32 %v547_v45, %v554_v53 }
 0x233   : > { %v561_v55 = vmul.f32 1.442695, %v560_v54 }
 0x234   : > { %v465_v56 = vpop.xlane.xlu2 %464 }
 0x235   : > { %972 = vpow2.f32 %v561_v55  ;;  %v466_v57 = vmax.f32 %v350_v25, %v465_v56  ;;  %v555_v25 = vsub.f32 0.0, %v554_v53 }
 0x237   : > { %v472_v58 = vsub.f32 %v459_v48, %v466_v57  ;;  %v556_v26 = vmin.f32 %v555_v25, 0.0  ;;  %v467_v28 = vsub.f32 0.0, %v466_v57 }
 0x239   : > { %v473_v59 = vmul.f32 1.442695, %v472_v58  ;;  %v557_v29 = vmul.f32 1.442695, %v556_v26  ;;  %v468_v30 = vmin.f32 %v467_v28, 0.0 }
 0x23b   : > { %v973_v60 = vpop.eup %972  ;;  %974 = vpow2.f32 %v473_v59  ;;  %v469_v31 = vmul.f32 1.442695, %v468_v30 }
 0x23c   : > { %v563_v61 = vsel %vm1323_vm4, %v973_v60, 0.0  ;;  %v482_v62 = vpop.permute.xlu2 %481  ;;  %976 = vpow2.f32 %v644_v7  ;;  %v678_v21 = vpop.f32.mrf.mxu2 }
 0x23d   : > { %v564_v63 = vsel %vm351_vm0, %v563_v61, 0.0  ;;  %502 = vmatpush.msra.mxu3 %v482_v62 }
 0x23e   : > { %565 = vadd.xlane.f32.xlu0 %v564_v63 }
 0x241   : > { %v975_v0 = vpop.eup %974 }
 0x242   : > { %v475_v1 = vsel %vm1323_vm4, %v975_v0, 0.0  ;;  %v977_v8 = vpop.eup %976 }
 0x243   : > { %878 = vmatmul.msk.f32.vlgmr.msra.gmra.mxu3 %vm351_vm0, %v475_v1  ;;  %v476_v2 = vsel %vm351_vm0, %v475_v1, 0.0  ;;  %v646_v9 = vmul.f32 %v977_v8, %v1334_v23  ;;  %v383_v1 = vsub.f32 0.0, %v1337_v27 }
 0x244   : > { %477 = vadd.xlane.f32.xlu2 %v476_v2 }
 0x245   : > { %v384_v2 = vmin.f32 %v383_v1, 0.0 }
 0x246   : > { %v569_v3 = vpop.permute.xlu1 %568 }
 0x247   : > { %589 = vmatpush.msrb.mxu3 %v569_v3  ;;  %v385_v3 = vmul.f32 1.442695, %v384_v2 }
 0x24b   : > { %881 = vmatmul.msk.f32.vlgmr.msrb.gmra.mxu3 %vm351_vm0, %v563_v61 }
 0x24c   : > { %393 = vadd.xlane.f32.xlu2 %v392_v4 }
 0x271   : > { %v653_v10 = vpop.xlane.xlu1 %652 }
 0x272   : > { %v654_v11 = vadd.f32 %v653_v10, %v646_v9 }
 0x274   : > { %978 = vrcp.f32 %v654_v11  ;;  %v692_v15 = vand.u32 2147483648, %v654_v11  ;;  %v690_v17 = vand.u32 2147483647, %v654_v11  ;;  %vm686_vm9 = vweird.f32 %v654_v11 }
 0x275   : > { %980 = vpow2.f32 %v557_v29 }
 0x276   : > { %v693_v19 = vor.u32 1.1754944e-38, %v692_v15  ;;  %vm691_vm11 = vcmp.eq.f32.partialorder %v690_v17, 8.507059e+37  ;;  %982 = vpow2.f32 %v469_v31 }
 0x27a   : > { %v979_v12 = vpop.eup %978 }
 0x27b   : > { %v682_v13 = vmul.f32 %v979_v12, %v654_v11  ;;  %vm687_vm8 = vweird.f32 %v979_v12  ;;  %v981_v32 = vpop.eup %980 }
 0x27c   : > { %vm688_vm10 = vmor %vm686_vm9, %vm687_vm8  ;;  %v559_v33 = vmul.f32 %v981_v32, %v1334_v23  ;;  %v983_v36 = vpop.eup %982  ;;  %vm709_vm9 = vcmask 130048  }
 0x27d   : > { %v683_v14 = vsub.f32 1.0, %v682_v13  ;;  %v471_v37 = vmul.f32 %v983_v36, %v1334_v23 }
 0x27f   : > { %v684_v16 = vmul.f32 %v979_v12, %v683_v14 }
 0x281   : > { %v685_v18 = vadd.f32 %v979_v12, %v684_v16 }
 0x283   : > { %v689_v20 = vsel %vm688_vm10, %v979_v12, %v685_v18  ;;  %vm711_vm10 = vcmask 195584  }
 0x284   : > { %v694_v22 = vsel %vm691_vm11, %v693_v19, %v689_v20  ;;  %vm713_vm11 = vcmask 261120  }
 0x285   : > { %v695_v24 = vmul.f32 %v694_v22, %v678_v21 }
 0x287   : > { %705 = vrot.lane.b32.xlu1 %v695_v24, %s1174_s19 }
 0x2b1   : > { %v566_v34 = vpop.xlane.xlu0 %565 }
 0x2b2   : > { %v567_v35 = vadd.f32 %v566_v34, %v559_v33 }
 0x2b4   : > { %984 = vrcp.f32 %v567_v35  ;;  %v605_v55 = vand.u32 2147483648, %v567_v35  ;;  %vm599_vm2 = vweird.f32 %v567_v35  ;;  %v603_v57 = vand.u32 2147483647, %v567_v35 }
 0x2b6   : > { %v606_v61 = vor.u32 1.1754944e-38, %v605_v55  ;;  %vm604_vm4 = vcmp.eq.f32.partialorder %v603_v57, 8.507059e+37 }
 0x2b7   : > { %v478_v38 = vpop.xlane.xlu2 %477 }
 0x2b8   : > { %v479_v39 = vadd.f32 %v478_v38, %v471_v37 }
 0x2ba   : > { %v985_v40 = vpop.eup %984  ;;  %986 = vrcp.f32 %v479_v39  ;;  %v518_v48 = vand.u32 2147483648, %v479_v39  ;;  %v516_v50 = vand.u32 2147483647, %v479_v39  ;;  %vm512_vm13 = vweird.f32 %v479_v39 }
 0x2bb   : > { %v595_v42 = vmul.f32 %v985_v40, %v567_v35  ;;  %vm600_vm14 = vweird.f32 %v985_v40  ;;  %988 = vpow2.f32 %v385_v3 }
 0x2bc   : > { %v519_v54 = vor.u32 1.1754944e-38, %v518_v48  ;;  %vm517_vm1 = vcmp.eq.f32.partialorder %v516_v50, 8.507059e+37  ;;  %vm601_vm3 = vmor %vm599_vm2, %vm600_vm14 }
 0x2bd   : > { %v596_v43 = vsub.f32 1.0, %v595_v42 }
 0x2bf   : > { %v597_v47 = vmul.f32 %v985_v40, %v596_v43  ;;  %v394_v5 = vpop.xlane.xlu2 %393 }
 0x2c0   : > { %v987_v44 = vpop.eup %986 }
 0x2c1   : > { %v508_v45 = vmul.f32 %v987_v44, %v479_v39  ;;  %vm513_vm12 = vweird.f32 %v987_v44  ;;  %v598_v53 = vadd.f32 %v985_v40, %v597_v47  ;;  %v989_v4 = vpop.eup %988 }
 0x2c2   : > { %vm514_vm15 = vmor %vm512_vm13, %vm513_vm12  ;;  %v387_v6 = vmul.f32 %v989_v4, %v1334_v23 }
 0x2c3   : > { %v509_v46 = vsub.f32 1.0, %v508_v45  ;;  %v602_v60 = vsel %vm601_vm3, %v985_v40, %v598_v53 }
 0x2c4   : > { %v607_v63 = vsel %vm604_vm4, %v606_v61, %v602_v60  ;;  %v395_v7 = vadd.f32 %v394_v5, %v387_v6 }
 0x2c5   : > { %v510_v49 = vmul.f32 %v987_v44, %v509_v46 }
 0x2c6   : > { %v504_v51 = vpop.f32.mrf.mxu3  ;;  %990 = vrcp.f32 %v395_v7  ;;  %v430_v13 = vand.u32 2147483648, %v395_v7  ;;  %vm424_vm6 = vweird.f32 %v395_v7  ;;  %v428_v27 = vand.u32 2147483647, %v395_v7 }
 0x2c7   : > { %v511_v52 = vadd.f32 %v987_v44, %v510_v49 }
 0x2c8   : > { %v431_v15 = vor.u32 1.1754944e-38, %v430_v13  ;;  %vm429_vm8 = vcmp.eq.f32.partialorder %v428_v27, 8.507059e+37 }
 0x2c9   : > { %v515_v56 = vsel %vm514_vm15, %v987_v44, %v511_v52 }
 0x2ca   : > { %v520_v58 = vsel %vm517_vm1, %v519_v54, %v515_v56 }
 0x2cb   : > { %v521_v59 = vmul.f32 %v520_v58, %v504_v51 }
 0x2cc   : > { %v991_v8 = vpop.eup %990 }
 0x2cd   : > { %697 = vrot.lane.b32.xlu2 %v521_v59, %s1175_s21  ;;  %v420_v9 = vmul.f32 %v991_v8, %v395_v7  ;;  %vm425_vm5 = vweird.f32 %v991_v8 }
 0x2ce   : > { %v591_v62 = vpop.f32.mrf.mxu3  ;;  %vm426_vm7 = vmor %vm424_vm6, %vm425_vm5 }
 0x2cf   : > { %v608_v0 = vmul.f32 %v607_v63, %v591_v62  ;;  %v421_v10 = vsub.f32 1.0, %v420_v9 }
 0x2d1   : > { %701 = vrot.lane.b32.xlu0 %v608_v0, %s1176_s23  ;;  %v422_v11 = vmul.f32 %v991_v8, %v421_v10 }
 0x2d3   : > { %v423_v12 = vadd.f32 %v991_v8, %v422_v11 }
 0x2d5   : > { %v427_v14 = vsel %vm426_vm7, %v991_v8, %v423_v12 }
 0x2d6   : > { %v432_v16 = vsel %vm429_vm8, %v431_v15, %v427_v14 }
 0x2d7   : > { %v433_v17 = vmul.f32 %v432_v16, %v1350_v41 }
 0x2f9   : > { %v706_v20 = vpop.permute.xlu1 %705 }
 0x327   : > { %v698_v23 = vpop.permute.xlu2 %697 }
 0x328   : > { %v708_v18 = vsel %vm351_vm0, %v433_v17, %v698_v23 }
 0x343   : > { %v702_v19 = vpop.permute.xlu0 %701 }
 0x344   : > { %v710_v21 = vsel %vm709_vm9, %v708_v18, %v702_v19 }
 0x345   : > { %v712_v22 = vsel %vm711_vm10, %v710_v21, %v706_v20 }
 0x346   : > { %714 = vst.msk [vmem:[%s309_s5] sm:$0xff] %vm713_vm11, %v712_v22 }
 0x347   : > { %1109 = shalt.err (!%p1106_p13)
}
 0x348   : > { %895 = dma.vmem_to_hbm [thread:$0]  (%p1252_p9), %s730_s9, 128, %s732_s11, %s716_s15  }
 0x349 PF: > { %s743_s22 = sand.u32 1, %s1148_s12   ;;  %p908_p0 = pnand %p860_p12, %p1259_p11 }
 0x34a   : > { %s744_s4 = scalar_lea.sflag [#allocation4], %s743_s22 }
 0x34b   : > { %p909_p1 = pneg %p908_p0 }
 0x34d   : > { %1143 = dma.done.wait (%p909_p1), %s744_s4, 128  }
 0x34e   : > { %1145 = vsyncadd (%p909_p1), %s744_s4, 4294967168  ;;  %s22_s17 = sadd.s32 1, %s1168_s17   ;;  %s1438_s18 = sld [smem:[#allocation14_spill]] }
 0x34f   : > { %p19_p2 = scmp.ge.s32.totalorder %s22_s17, 4   ;;  %s1439_s15 = sld [smem:[#allocation12_spill]] }
 0x350   : > { %s1440_s16 = sld [smem:[#allocation13_spill]]  ;;  %s1441_s12 = smov %s1152_s13 }
 0x351   : > { %s1442_s13 = smov %s1156_s14  ;;  %21 = sbr.rel (!%p19_p2) target bundleno = 10 (0xa), region = 101 }
 0x354   : > { %s1443_s14 = smov %s1438_s18 }
 0x356   :  { %750 = vsyncpa [#allocation3], 1 }
 0x357   :  { %752 = vsyncpa [#allocation3 + $0x1], 1 }
 0x358   :  { %753 = vsyncpa [#allocation6], 1 }
 0x359   :  { %755 = vsyncpa [#allocation6 + $0x1], 1 }
 0x35a   :  { %756 = vsyncpa [#allocation4], 1 }
 0x35b   :  { %758 = vsyncpa [#allocation4 + $0x1], 1 }

</bundles_post_ra>
